<compile_context>
chip_gen: v6e
topology: v6e:2x2x1
jax: 0.10.0
libtpu: 0.0.40
codegen_flags: <defaults>
</compile_context>

<pallas_src>
import functools

import jax
import jax.numpy as jnp
from jax import lax
from jax.experimental import pallas as pl
from jax.experimental.pallas import tpu as pltpu

TEMPERATURE = 0.1
SCALE_BY_TEMPERATURE = True
_LANE = 128


def _round_up(x, m):
    return (x + m - 1) // m * m


def _largest_divisor_tile(total, want):
    """Largest tile in {1024,512,256,128} that divides `total` and is <= want."""
    for cand in (1024, 512, 256, 128):
        if cand <= want and total % cand == 0:
            return cand
    return 128


def _default_tq():
    # v6e/v7x have a 256-wide MXU -> feed 256 query rows; v5e/v4 keep 128.
    try:
        kind = jax.devices()[0].device_kind.lower()
    except Exception:
        return 128
    return 256 if ("v6" in kind or "v7" in kind or "7x" in kind) else 128


def _vmem_cap_bytes():
    # Per-generation VMEM cap with ~25% headroom (v7x: 64 MiB/TC -> ~48 MiB,
    # v5e/v6e: 128 MiB -> ~96 MiB).  Fallback is the most restrictive chip.
    try:
        cap = int(pltpu.get_tpu_info().vmem_capacity_bytes)
    except Exception:
        cap = 64 * 1024 * 1024
    return (cap * 3) // 4


# --------------------------------------------------------------------------
# Kernel A: tiled L2 normalization (F.normalize(p=2, dim=1), eps=1e-12).
# rsqrt(max(ss, eps^2)) == 1 / max(||f||, eps): EUP rsqrt + VPU multiply.
# --------------------------------------------------------------------------
def _normalize_kernel(f_ref, out_ref):
    f = f_ref[...]                                            # (TA, Dp) f32
    ss = jnp.sum(f * f, axis=1, keepdims=True)
    inv = lax.rsqrt(jnp.maximum(ss, 1e-24))
    out_ref[...] = (f * inv).astype(out_ref.dtype)            # bf16 MXU operand


# --------------------------------------------------------------------------
# Kernel B: SupCon loss, 2-D grid over (query-row tile, key-column tile).
# Accumulates denom / num_pos / sum(logits*pos) across k-steps in VMEM
# scratch; emits one tile-reduced lane-dense block per query tile.
# --------------------------------------------------------------------------
def _supcon_row_kernel(q_lab_ref, c_lab_ref, q_id_ref, c_id_ref,
                       row_valid_ref, col_valid_ref, q_ref, k_ref,
                       loss_ref, count_ref,
                       den_acc, np_acc, spl_acc, *,
                       temperature, scale_by_temperature):
    k_step = pl.program_id(1)
    inv_temp = 1.0 / temperature

    @pl.when(k_step == 0)
    def _():
        den_acc[...] = jnp.zeros_like(den_acc)
        np_acc[...] = jnp.zeros_like(np_acc)
        spl_acc[...] = jnp.zeros_like(spl_acc)

    # (TQ, Dp) x (TK, Dp), contracting the last dim of BOTH operands
    # (no physical transpose of the key tile), f32 accumulation.
    s = lax.dot_general(q_ref[...], k_ref[...],
                        dimension_numbers=(((1,), (1,)), ((), ())),
                        preferred_element_type=jnp.float32)   # (TQ, TK) f32
    # Row max of anchor_dot_contrast over all columns is the self-similarity
    # == 1/temperature (Cauchy-Schwarz on L2-normalized rows); the loss is
    # mathematically invariant to the constant subtracted, so subtract it
    # directly -> no online max, no rescale pass between k-steps.  The
    # temperature fold and max subtraction fuse into one f32 op on the
    # accumulator (more accurate than pre-scaling a bf16 operand).
    logits = (s - 1.0) * inv_temp
    e = jnp.exp(logits)

    # allow == (column is a real sample) AND (column != row).  Self columns
    # are always real, so allow = col_valid - is_self as a float subtract.
    # neg_mask + pos_mask == allow, so the denominator is a single masked sum.
    is_self = (q_id_ref[...] == c_id_ref[...]).astype(jnp.float32)  # (TQ,TK)
    allow_f = col_valid_ref[...] - is_self                          # (TQ,TK)
    pos_f = jnp.where(q_lab_ref[...] == c_lab_ref[...], allow_f, 0.0)

    den_acc[...] += jnp.sum(e * allow_f, axis=1, keepdims=True)     # (TQ,1)
    np_acc[...] += jnp.sum(pos_f, axis=1, keepdims=True)            # (TQ,1)
    spl_acc[...] += jnp.sum(logits * pos_f, axis=1, keepdims=True)  # (TQ,1)

    @pl.when(k_step == pl.num_programs(1) - 1)
    def _():
        num_pos = np_acc[...]
        denom = jnp.maximum(den_acc[...], 1e-30)
        valid = (num_pos > 0.0) & (row_valid_ref[...] > 0.0)        # (TQ,1)
        safe_np = jnp.where(valid, num_pos, 1.0)
        # sum(log_probs * pos) = sum(logits * pos) - log(denom) * num_pos
        mean_log_prob = (spl_acc[...] - jnp.log(denom) * num_pos) / safe_np
        loss_rows = -mean_log_prob
        if scale_by_temperature:
            loss_rows = loss_rows * temperature
        loss_rows = jnp.where(valid, loss_rows, 0.0)
        # In-tile sublane reduce -> one tiny lane-dense block per query tile.
        loss_sum = jnp.sum(loss_rows, axis=0, keepdims=True)[None]  # (1,1,1)
        cnt = jnp.sum(valid.astype(jnp.float32), axis=0, keepdims=True)[None]
        loss_ref[...] = jnp.broadcast_to(loss_sum, loss_ref.shape)
        count_ref[...] = jnp.broadcast_to(cnt, count_ref.shape)
    # TODO(synk): torch.any(torch.isnan(log_probs)) -> raise has no in-kernel
    # equivalent on TPU (no exceptions); check omitted.


# --------------------------------------------------------------------------
# Wrapper
# --------------------------------------------------------------------------
def supcon_loss(features, labels, *, temperature=TEMPERATURE,
                scale_by_temperature=SCALE_BY_TEMPERATURE,
                tq=None, tk=None):
    """features: [B, D] float; labels: [B] int. Returns scalar loss."""
    f = features.astype(jnp.float32)
    b, d = f.shape
    if tq is None:
        tq = _default_tq()
    bp = _round_up(b, tq)                 # tq is a multiple of 128
    dp = _round_up(d, _LANE)
    if tk is None:
        tk = 512                          # key-column tile (streams via DMA)
    tk = _largest_divisor_tile(bp, max(tk, 128))
    cap = _vmem_cap_bytes()

    # Pad to 128-aligned shapes (full vregs, unmasked stores, full MXU tiles).
    f_pad = jnp.zeros((bp, dp), jnp.float32).at[:b, :d].set(f)
    lab_pad = jnp.full((bp,), -1, jnp.int32).at[:b].set(
        labels.reshape(-1).astype(jnp.int32))
    ids = jnp.arange(bp, dtype=jnp.int32)
    real = (ids < b).astype(jnp.float32)
    lab_q, lab_c = lab_pad.reshape(bp, 1), lab_pad.reshape(1, bp)
    id_q, id_c = ids.reshape(bp, 1), ids.reshape(1, bp)
    row_valid, col_valid = real.reshape(bp, 1), real.reshape(1, bp)

    # ---- Kernel A: normalized bf16 feature matrix (both MXU operands) ----
    ta = _largest_divisor_tile(bp, 1024)          # big blocks: HBM-bound pass
    vmem_a = min(max(20 * ta * dp + (4 << 20), 32 << 20), cap)
    fn_bf16 = pl.pallas_call(
        _normalize_kernel,
        out_shape=jax.ShapeDtypeStruct((bp, dp), jnp.bfloat16),
        grid=(bp // ta,),
        in_specs=[pl.BlockSpec((ta, dp), lambda i: (i, 0))],
        out_specs=pl.BlockSpec((ta, dp), lambda i: (i, 0)),
        compiler_params=pltpu.CompilerParams(
            dimension_semantics=("parallel",),
            vmem_limit_bytes=vmem_a),
    )(f_pad)

    # ---- Kernel B: SupCon loss over (query tile, key tile) grid ----
    n_q, n_k = bp // tq, bp // tk
    kernel = functools.partial(
        _supcon_row_kernel, temperature=float(temperature),
        scale_by_temperature=bool(scale_by_temperature))

    vmem_b = (2 * tq * dp * 2 + 2 * tk * dp * 2     # bf16 Q/K blocks (2-buf)
              + 6 * tq * tk * 4                     # (TQ,TK) f32 temporaries
              + 2 * 3 * tq * _LANE * 4              # row-side small blocks
              + 2 * 3 * 8 * tk * 4                  # col-side small blocks
              + 3 * tq * _LANE * 4                  # accumulators
              + 4 * 8 * _LANE * 4                   # tile-reduced outputs
              + (8 << 20))                          # headroom
    vmem_b = min(max(vmem_b, 32 << 20), cap)

    loss_t, count_t = pl.pallas_call(
        kernel,
        out_shape=(jax.ShapeDtypeStruct((n_q, 8, _LANE), jnp.float32),
                   jax.ShapeDtypeStruct((n_q, 8, _LANE), jnp.float32)),
        grid=(n_q, n_k),
        in_specs=[pl.BlockSpec((tq, 1), lambda i, k: (i, 0)),    # query labels
                  pl.BlockSpec((1, tk), lambda i, k: (0, k)),    # key labels
                  pl.BlockSpec((tq, 1), lambda i, k: (i, 0)),    # query ids
                  pl.BlockSpec((1, tk), lambda i, k: (0, k)),    # key ids
                  pl.BlockSpec((tq, 1), lambda i, k: (i, 0)),    # row validity
                  pl.BlockSpec((1, tk), lambda i, k: (0, k)),    # col validity
                  pl.BlockSpec((tq, dp), lambda i, k: (i, 0)),   # Q tile bf16
                  pl.BlockSpec((tk, dp), lambda i, k: (k, 0))],  # K tile bf16
        out_specs=(pl.BlockSpec((1, 8, _LANE), lambda i, k: (i, 0, 0)),
                   pl.BlockSpec((1, 8, _LANE), lambda i, k: (i, 0, 0))),
        scratch_shapes=[pltpu.VMEM((tq, 1), jnp.float32),   # denom acc
                        pltpu.VMEM((tq, 1), jnp.float32),   # num_pos acc
                        pltpu.VMEM((tq, 1), jnp.float32)],  # sum(logits*pos)
        compiler_params=pltpu.CompilerParams(
            dimension_semantics=("parallel", "arbitrary"),
            vmem_limit_bytes=vmem_b),
    )(lab_q, lab_c, id_q, id_c, row_valid, col_valid, fn_bf16, fn_bf16)

    loss_sum = jnp.sum(loss_t[:, 0, 0])
    n_valid = jnp.sum(count_t[:, 0, 0])
    # TODO(synk): PyTorch yields NaN (mean of empty tensor) when no row has a
    # positive; we return 0 instead.
    return loss_sum / jnp.maximum(n_valid, 1.0)


# --------------------------------------------------------------------------
# Pure-JAX f32 reference mirroring the PyTorch forward exactly.
# --------------------------------------------------------------------------
def supcon_loss_ref(features, labels, *, temperature=TEMPERATURE,
                    scale_by_temperature=SCALE_BY_TEMPERATURE):
    f = features.astype(jnp.float32)
    norm = jnp.sqrt(jnp.sum(f * f, axis=1, keepdims=True))
    fn = f / jnp.maximum(norm, 1e-12)
    B = f.shape[0]
    lab = labels.reshape(-1, 1)
    mask = (lab == lab.T).astype(jnp.float32)
    adc = (fn @ fn.T) / temperature
    logits = adc - jnp.max(adc, axis=1, keepdims=True)
    exp_logits = jnp.exp(logits)
    eye = jnp.eye(B, dtype=jnp.float32)
    pos_mask = mask * (1.0 - eye)
    neg_mask = 1.0 - mask
    num_pos = jnp.sum(pos_mask, axis=1, keepdims=True)
    denom = (jnp.sum(exp_logits * neg_mask, axis=1, keepdims=True)
             + jnp.sum(exp_logits * pos_mask, axis=1, keepdims=True))
    log_probs = logits - jnp.log(denom)
    valid = (num_pos > 0).astype(jnp.float32)
    safe_num = jnp.where(num_pos > 0, num_pos, 1.0)
    per_row = jnp.sum(log_probs * pos_mask, axis=1, keepdims=True) / safe_num
    loss_rows = -per_row
    if scale_by_temperature:
        loss_rows = loss_rows * temperature
    return jnp.sum(loss_rows * valid) / jnp.maximum(jnp.sum(valid), 1.0)


if __name__ == "__main__":
    key = jax.random.PRNGKey(0)
    kf, kl = jax.random.split(key)
    B, D = 8, 32
    features = jax.random.normal(kf, (B, D), dtype=jnp.float32)
    labels = jax.random.randint(kl, (B,), 0, 3, dtype=jnp.int32)

    loss = jax.block_until_ready(supcon_loss(features, labels))
    ref = jax.block_until_ready(supcon_loss_ref(features, labels))

    # bf16 MXU operands (f32 accumulation) -> small numeric tolerance.
    assert jnp.isfinite(loss), loss
    assert jnp.allclose(loss, ref, atol=2e-2, rtol=2e-2), (loss, ref)

    print("KERNEL_OK")
</pallas_src>

<mosaic_0001>
module attributes {stable_mosaic.version = 11 : i64} {
  func.func @_normalize_kernel(%arg0: i32, %arg1: memref<128x128xf32, #tpu.memory_space<vmem>>, %arg2: memref<128x128xbf16, #tpu.memory_space<vmem>>) attributes {dimension_semantics = [#tpu.dimension_semantics<parallel>], iteration_bounds = array<i64: 1>, scalar_prefetch = 0 : i64, scratch_operands = 0 : i64, tpu.core_type = #tpu.core_type<tc>, window_params = [{transform_indices = @transform_0, window_bounds = array<i64: 128, 128>}, {transform_indices = @transform_1, window_bounds = array<i64: 128, 128>}]} {
    %c0 = arith.constant 0 : index
    %c0_0 = arith.constant 0 : index
    %0 = vector.load %arg1[%c0, %c0_0] : memref<128x128xf32, #tpu.memory_space<vmem>>, vector<128x128xf32>
    %1 = arith.mulf %0, %0 : vector<128x128xf32>
    %cst = arith.constant dense<0.000000e+00> : vector<128xf32>
    %2 = vector.multi_reduction <add>, %1, %cst [1] : vector<128x128xf32> to vector<128xf32>
    %3 = vector.shape_cast %2 : vector<128xf32> to vector<128x1xf32>
    %cst_1 = arith.constant 1.000000e-24 : f32
    %4 = vector.broadcast %cst_1 : f32 to vector<128x1xf32>
    %5 = arith.maximumf %3, %4 : vector<128x1xf32>
    %6 = math.rsqrt %5 : vector<128x1xf32>
    %7 = vector.broadcast %6 : vector<128x1xf32> to vector<128x128xf32>
    %8 = arith.mulf %0, %7 : vector<128x128xf32>
    %9 = arith.truncf %8 : vector<128x128xf32> to vector<128x128xbf16>
    %c0_2 = arith.constant 0 : index
    %c0_3 = arith.constant 0 : index
    %10 = vector.load %arg2[%c0_2, %c0_3] : memref<128x128xbf16, #tpu.memory_space<vmem>>, vector<128x128xbf16>
    tpu.vector_store %arg2[%c0_2, %c0_3], %9 {strides = array<i32>} : memref<128x128xbf16, #tpu.memory_space<vmem>>, vector<128x128xbf16>,
    return
  }
  func.func @transform_0(%arg0: i32) -> (i32, i32) {
    %c0_i32 = arith.constant 0 : i32
    %c0_i32_0 = arith.constant 0 : i32
    return %arg0, %c0_i32 : i32, i32
  }
  func.func @transform_1(%arg0: i32) -> (i32, i32) {
    %c0_i32 = arith.constant 0 : i32
    %c0_i32_0 = arith.constant 0 : i32
    return %arg0, %c0_i32 : i32, i32
  }
}

</mosaic_0001>

<bundles_post_ra>
// kernel: tpu_custom_call.1
= control target key start
LH: loop header
LB: loop body
LE: loop exit
PB: predicated region body
PF: predicated region fallthrough
CT: control target
= control target key end

     0   :  { %6 = vsyncpa [#allocation3], 0  ;;  %s495_s0 = inlined_call_operand.hbm [shape: f32[128,128], index: 0, kind: input, shape index: {}]   ;;  %s496_s1 = inlined_call_operand.hbm [shape: bf16[128,128], index: 1, kind: output, shape index: {}]  }
   0x1   :  { %7 = vsyncpa [#allocation4], 0  ;;  %s393_s6 = smov [#allocation2]  }
   0x2   :  { %s13_s7 = sshll.u32 %s393_s6, 4  ;;  %s14_s7 = int_to_ptr.vmem [resolvable:$true] %s13_s7 }
   0x3   :  { %s357_s8 = scalar_lea.vmem %s14_s7, 2048  ;;  %p362_p1 = scmp.lt.s32.totalorder %s14_s7, %s14_s7 }
   0x4   :  { %p358_p0 = scmp.ne.s32.totalorder %s14_s7, %s357_s8  ;;  %p363_p2 = scmp.lt.s32.totalorder %s357_s8, %s357_s8 }
   0x6   :  { %p364_p3 = por %p363_p2, %p362_p1 }
   0x8   :  { %p365_p4 = pnand %p364_p3, %p358_p0 }
   0xa   :  { %368 = shalt.err (!%p365_p4)
}
   0xb   :  { %s394_s9 = smov 128   ;;  %s395_s10 = smov 8  }
   0xc   :  { %19 = dma.hbm_to_vmem [thread:$0]  %s495_s0, 2048, %s14_s7, [#allocation3], %s394_s9, %s394_s9, %s395_s10  }
   0xd   :  { %389 = dma.done.wait [#allocation3], 2048  }
   0xe   :  { %390 = vsyncadd [#allocation3], 4294965248  ;;  %v412_v0 = vld [vmem:[#allocation2 + $0x10] sm:$0xff]  ;;  %v414_v1 = vld [vmem:[#allocation2] sm:$0xff]  ;;  %s396_s0 = smov [#allocation5]  }
   0xf   :  { %v416_v2 = vld [vmem:[#allocation2 + $0x18] sm:$0xff]  ;;  %v41_v3 = vmul.f32 %v412_v0, %v412_v0  ;;  %v39_v4 = vmul.f32 %v414_v1, %v414_v1  ;;  %v422_v5 = vld [vmem:[#allocation2 + $0x8] sm:$0xff]  ;;  %v430_v9 = vld [vmem:[#allocation2 + $0x20] sm:$0xff]  ;;  %s220_s13 = sshll.u32 %s396_s0, 4  ;;  %s221_s13 = int_to_ptr.vmem [resolvable:$true] %s220_s13 }
  0x10   :  { %v42_v6 = vmul.f32 %v416_v2, %v416_v2  ;;  %v40_v7 = vmul.f32 %v422_v5, %v422_v5  ;;  %v428_v8 = vld [vmem:[#allocation2 + $0x28] sm:$0xff]  ;;  %v43_v11 = vmul.f32 %v430_v9, %v430_v9  ;;  %v436_v12 = vld [vmem:[#allocation2 + $0x38] sm:$0xff]  ;;  %v438_v13 = vld [vmem:[#allocation2 + $0x30] sm:$0xff]  ;;  %s369_s14 = scalar_lea.vmem %s221_s13, 1024  ;;  %p374_p6 = scmp.lt.s32.totalorder %s221_s13, %s221_s13 }
  0x11   :  { %59 = vadd.xlane.f32.xlu1 %v41_v3  ;;  %55 = vadd.xlane.f32.xlu0 %v39_v4  ;;  %v44_v10 = vmul.f32 %v428_v8, %v428_v8  ;;  %v46_v14 = vmul.f32 %v436_v12, %v436_v12  ;;  %v45_v15 = vmul.f32 %v438_v13, %v438_v13  ;;  %v444_v16 = vld [vmem:[#allocation2 + $0x48] sm:$0xff]  ;;  %v446_v17 = vld [vmem:[#allocation2 + $0x40] sm:$0xff]  ;;  %v452_v20 = vld [vmem:[#allocation2 + $0x58] sm:$0xff]  ;;  %p370_p5 = scmp.ne.s32.totalorder %s221_s13, %s369_s14  ;;  %p375_p7 = scmp.lt.s32.totalorder %s369_s14, %s369_s14 }
  0x12   :  { %v48_v18 = vmul.f32 %v444_v16, %v444_v16  ;;  %v47_v19 = vmul.f32 %v446_v17, %v446_v17  ;;  %v454_v21 = vld [vmem:[#allocation2 + $0x50] sm:$0xff]  ;;  %v50_v22 = vmul.f32 %v452_v20, %v452_v20  ;;  %v460_v24 = vld [vmem:[#allocation2 + $0x68] sm:$0xff]  ;;  %v462_v25 = vld [vmem:[#allocation2 + $0x60] sm:$0xff] }
  0x13   :  { %v49_v23 = vmul.f32 %v454_v21, %v454_v21  ;;  %v52_v26 = vmul.f32 %v460_v24, %v460_v24  ;;  %v51_v27 = vmul.f32 %v462_v25, %v462_v25  ;;  %v468_v28 = vld [vmem:[#allocation2 + $0x78] sm:$0xff]  ;;  %v470_v29 = vld [vmem:[#allocation2 + $0x70] sm:$0xff]  ;;  %p376_p8 = por %p375_p7, %p374_p6 }
  0x14   :  { %v54_v30 = vmul.f32 %v468_v28, %v468_v28  ;;  %v53_v31 = vmul.f32 %v470_v29, %v470_v29 }
  0x15   :  { %61 = vadd.xlane.f32.xlu1 %v42_v6  ;;  %57 = vadd.xlane.f32.xlu0 %v40_v7  ;;  %p377_p9 = pnand %p376_p8, %p370_p5 }
  0x19   :  { %65 = vadd.xlane.f32.xlu1 %v44_v10  ;;  %63 = vadd.xlane.f32.xlu0 %v43_v11 }
  0x1d   :  { %69 = vadd.xlane.f32.xlu1 %v46_v14  ;;  %67 = vadd.xlane.f32.xlu0 %v45_v15 }
  0x21   :  { %73 = vadd.xlane.f32.xlu1 %v48_v18  ;;  %71 = vadd.xlane.f32.xlu0 %v47_v19 }
  0x25   :  { %77 = vadd.xlane.f32.xlu1 %v50_v22  ;;  %75 = vadd.xlane.f32.xlu0 %v49_v23 }
  0x29   :  { %81 = vadd.xlane.f32.xlu1 %v52_v26  ;;  %79 = vadd.xlane.f32.xlu0 %v51_v27 }
  0x2d   :  { %85 = vadd.xlane.f32.xlu1 %v54_v30  ;;  %83 = vadd.xlane.f32.xlu0 %v53_v31 }
  0x9a   :  { %v60_v32 = vpop.xlane.xlu1 %59  ;;  %v56_v33 = vpop.xlane.xlu0 %55 }
  0x9b   :  { %v89_v34 = vmax.f32 %v60_v32, 1e-24  ;;  %v87_v35 = vmax.f32 %v56_v33, 1e-24 }
  0x9d   :  { %317 = vrsqrt.f32 %v89_v34 }
  0x9e   :  { %v62_v36 = vpop.xlane.xlu1 %61  ;;  %v58_v37 = vpop.xlane.xlu0 %57  ;;  %319 = vrsqrt.f32 %v87_v35 }
  0x9f   :  { %v90_v38 = vmax.f32 %v62_v36, 1e-24  ;;  %v88_v39 = vmax.f32 %v58_v37, 1e-24 }
  0xa1   :  { %321 = vrsqrt.f32 %v90_v38 }
  0xa2   :  { %323 = vrsqrt.f32 %v88_v39  ;;  %v66_v40 = vpop.xlane.xlu1 %65  ;;  %v64_v41 = vpop.xlane.xlu0 %63 }
  0xa3   :  { %v92_v42 = vmax.f32 %v66_v40, 1e-24  ;;  %v91_v43 = vmax.f32 %v64_v41, 1e-24 }
  0xa5   :  { %325 = vrsqrt.f32 %v92_v42 }
  0xa6   :  { %327 = vrsqrt.f32 %v91_v43  ;;  %v70_v44 = vpop.xlane.xlu1 %69  ;;  %v68_v45 = vpop.xlane.xlu0 %67 }
  0xa7   :  { %v94_v46 = vmax.f32 %v70_v44, 1e-24  ;;  %v93_v47 = vmax.f32 %v68_v45, 1e-24 }
  0xa9   :  { %329 = vrsqrt.f32 %v94_v46 }
  0xaa   :  { %331 = vrsqrt.f32 %v93_v47  ;;  %v74_v48 = vpop.xlane.xlu1 %73  ;;  %v72_v49 = vpop.xlane.xlu0 %71 }
  0xab   :  { %v96_v50 = vmax.f32 %v74_v48, 1e-24  ;;  %v95_v51 = vmax.f32 %v72_v49, 1e-24  ;;  %v318_v52 = vpop.eup %317 }
  0xac   :  { %v320_v53 = vpop.eup %319  ;;  %v121_v58 = vmul.f32 %v318_v52, %v412_v0 }
  0xad   :  { %333 = vrsqrt.f32 %v96_v50  ;;  %v119_v62 = vmul.f32 %v320_v53, %v414_v1 }
  0xae   :  { %v322_v54 = vpop.eup %321  ;;  %335 = vrsqrt.f32 %v95_v51  ;;  %v78_v55 = vpop.xlane.xlu1 %77 }
  0xaf   :  { %v76_v56 = vpop.xlane.xlu0 %75  ;;  %v324_v57 = vpop.eup %323  ;;  %v122_v59 = vmul.f32 %v322_v54, %v416_v2  ;;  %v98_v60 = vmax.f32 %v78_v55, 1e-24 }
  0xb0   :  { %v97_v61 = vmax.f32 %v76_v56, 1e-24  ;;  %v120_v63 = vmul.f32 %v324_v57, %v422_v5 }
  0xb1   :  { %v272_v3 = vpack.c.bf16 %v122_v59, %v121_v58  ;;  %337 = vrsqrt.f32 %v98_v60 }
  0xb2   :  { %v326_v4 = vpop.eup %325  ;;  %v267_v6 = vpack.c.bf16 %v120_v63, %v119_v62  ;;  %339 = vrsqrt.f32 %v97_v61  ;;  %v82_v7 = vpop.xlane.xlu1 %81 }
  0xb3   :  { %v80_v10 = vpop.xlane.xlu0 %79  ;;  %v328_v11 = vpop.eup %327  ;;  %304 = vst [vmem:[#allocation5 + $0x8] sm:$0xff] %v272_v3   ;;  %v124_v14 = vmul.f32 %v326_v4, %v428_v8  ;;  %v100_v0 = vmax.f32 %v82_v7, 1e-24 }
  0xb4   :  { %v99_v15 = vmax.f32 %v80_v10, 1e-24  ;;  %268 = vst [vmem:[#allocation5] sm:$0xff] %v267_v6   ;;  %v123_v2 = vmul.f32 %v328_v11, %v430_v9 }
  0xb5   :  { %341 = vrsqrt.f32 %v100_v0 }
  0xb6   :  { %v330_v1 = vpop.eup %329  ;;  %v277_v18 = vpack.c.bf16 %v124_v14, %v123_v2  ;;  %343 = vrsqrt.f32 %v99_v15  ;;  %v86_v5 = vpop.xlane.xlu1 %85 }
  0xb7   :  { %v84_v19 = vpop.xlane.xlu0 %83  ;;  %v332_v22 = vpop.eup %331  ;;  %v126_v23 = vmul.f32 %v330_v1, %v436_v12  ;;  %v102_v26 = vmax.f32 %v86_v5, 1e-24 }
  0xb8   :  { %v101_v27 = vmax.f32 %v84_v19, 1e-24  ;;  %305 = vst [vmem:[#allocation5 + $0x10] sm:$0xff] %v277_v18   ;;  %v125_v30 = vmul.f32 %v332_v22, %v438_v13 }
  0xb9   :  { %345 = vrsqrt.f32 %v102_v26 }
  0xba   :  { %v334_v8 = vpop.eup %333  ;;  %v282_v31 = vpack.c.bf16 %v126_v23, %v125_v30  ;;  %347 = vrsqrt.f32 %v101_v27 }
  0xbb   :  { %v336_v32 = vpop.eup %335  ;;  %v128_v9 = vmul.f32 %v334_v8, %v444_v16 }
  0xbc   :  { %306 = vst [vmem:[#allocation5 + $0x18] sm:$0xff] %v282_v31   ;;  %v127_v33 = vmul.f32 %v336_v32, %v446_v17 }
  0xbe   :  { %v338_v34 = vpop.eup %337  ;;  %v287_v35 = vpack.c.bf16 %v128_v9, %v127_v33 }
  0xbf   :  { %v340_v36 = vpop.eup %339  ;;  %v130_v12 = vmul.f32 %v338_v34, %v452_v20 }
  0xc0   :  { %307 = vst [vmem:[#allocation5 + $0x20] sm:$0xff] %v287_v35   ;;  %v129_v37 = vmul.f32 %v340_v36, %v454_v21 }
  0xc2   :  { %v342_v38 = vpop.eup %341  ;;  %v292_v13 = vpack.c.bf16 %v130_v12, %v129_v37 }
  0xc3   :  { %v344_v39 = vpop.eup %343  ;;  %v132_v40 = vmul.f32 %v342_v38, %v460_v24 }
  0xc4   :  { %308 = vst [vmem:[#allocation5 + $0x28] sm:$0xff] %v292_v13   ;;  %v131_v41 = vmul.f32 %v344_v39, %v462_v25 }
  0xc6   :  { %v346_v16 = vpop.eup %345  ;;  %v297_v42 = vpack.c.bf16 %v132_v40, %v131_v41 }
  0xc7   :  { %v348_v17 = vpop.eup %347  ;;  %v134_v43 = vmul.f32 %v346_v16, %v468_v28 }
  0xc8   :  { %309 = vst [vmem:[#allocation5 + $0x30] sm:$0xff] %v297_v42   ;;  %v133_v20 = vmul.f32 %v348_v17, %v470_v29 }
  0xca   :  { %v302_v21 = vpack.c.bf16 %v134_v43, %v133_v20 }
  0xcc   :  { %310 = vst [vmem:[#allocation5 + $0x38] sm:$0xff] %v302_v21  }
  0xcd   :  { %380 = shalt.err (!%p377_p9)
}
  0xce   :  { %s397_s15 = smov 64   ;;  %s398_s16 = smov 4  }
  0xcf   :  { %226 = dma.vmem_to_hbm [thread:$0]  %s221_s13, 1024, %s496_s1, [#allocation4], %s397_s15, %s397_s15, %s398_s16  }
  0xd0   :  { %391 = dma.done.wait [#allocation4], 1024  }
  0xd1   :  { %392 = vsyncadd [#allocation4], 4294966272 }
  0xd2   :  { %230 = vsyncpa [#allocation3], 1 }
  0xd3   :  { %231 = vsyncpa [#allocation4], 1 }

</bundles_post_ra>
